<compile_context>
chip_gen: v7x
topology: tpu7x:2x2x1
jax: 0.10.0
libtpu: 0.0.40
codegen_flags: <defaults>
</compile_context>

<pallas_src>
import functools

import jax
import jax.numpy as jnp
from jax import lax
from jax.experimental import pallas as pl
from jax.experimental.pallas import tpu as pltpu


def _fused_encoder_kernel(gin1_ref, whh1_ref, wih2_ref, whh2_ref, b2_ref,
                          out_ref, hn_ref, cn_ref,
                          h1_scr, c1_scr, h2_scr, c2_scr,
                          *, hidden_size):
    """Two stacked LSTM layers, time loop inside a single kernel invocation.

    gin1_ref : (S, B, 4H) f32  precomputed  x_t @ W_ih1^T + (b_ih1 + b_hh1)
    whh1_ref : (H, 4H)   bf16  recurrent weights, layer 1 (transposed)
    wih2_ref : (H, 4H)   bf16  input weights, layer 2 (transposed)
    whh2_ref : (H, 4H)   bf16  recurrent weights, layer 2 (transposed)
    b2_ref   : (1, 4H)   f32   b_ih2 + b_hh2
    out_ref  : (S, B, H) f32   layer-2 hidden states for every step
    hn_ref / cn_ref : (B, H) f32 final layer-2 state
    """
    H = hidden_size
    S = gin1_ref.shape[0]

    h1_scr[...] = jnp.zeros_like(h1_scr)
    c1_scr[...] = jnp.zeros_like(c1_scr)
    h2_scr[...] = jnp.zeros_like(h2_scr)
    c2_scr[...] = jnp.zeros_like(c2_scr)

    def split_gates(g):
        i = jax.nn.sigmoid(g[:, 0 * H:1 * H])
        f = jax.nn.sigmoid(g[:, 1 * H:2 * H])
        gg = jnp.tanh(g[:, 2 * H:3 * H])
        o = jax.nn.sigmoid(g[:, 3 * H:4 * H])
        return i, f, gg, o

    def body(t, carry):
        # ---------------- layer 1 (input projection already in gin1) --------
        g1 = gin1_ref[t] + jnp.dot(
            h1_scr[...].astype(jnp.bfloat16), whh1_ref[...],
            preferred_element_type=jnp.float32)
        i1, f1, gg1, o1 = split_gates(g1)
        c1_new = f1 * c1_scr[...] + i1 * gg1
        h1_new = o1 * jnp.tanh(c1_new)
        h1_scr[...] = h1_new
        c1_scr[...] = c1_new

        # ---------------- layer 2 (consumes h1_t straight from vregs) -------
        h1_bf = h1_new.astype(jnp.bfloat16)
        g2 = (jnp.dot(h1_bf, wih2_ref[...],
                      preferred_element_type=jnp.float32)
              + jnp.dot(h2_scr[...].astype(jnp.bfloat16), whh2_ref[...],
                        preferred_element_type=jnp.float32)
              + b2_ref[...])
        i2, f2, gg2, o2 = split_gates(g2)
        c2_new = f2 * c2_scr[...] + i2 * gg2
        h2_new = o2 * jnp.tanh(c2_new)
        h2_scr[...] = h2_new
        c2_scr[...] = c2_new

        out_ref[t] = h2_new
        return carry

    lax.fori_loop(0, S, body, 0)

    # Final state written exactly once (review item: no per-step hn/cn stores).
    hn_ref[...] = h2_scr[...]
    cn_ref[...] = c2_scr[...]


def _encoder_forward(gin1, whh1_t, wih2_t, whh2_t, b2, hidden_size):
    """gin1: (S, B, 4H) f32. Returns out (S,B,H), h_n (B,H), c_n (B,H)."""
    S, B, _ = gin1.shape
    H = hidden_size
    kernel = functools.partial(_fused_encoder_kernel, hidden_size=H)

    vmem = pl.BlockSpec(memory_space=pltpu.MemorySpace.VMEM)
    out, h_n, c_n = pl.pallas_call(
        kernel,
        out_shape=(jax.ShapeDtypeStruct((S, B, H), jnp.float32),
                   jax.ShapeDtypeStruct((B, H), jnp.float32),
                   jax.ShapeDtypeStruct((B, H), jnp.float32)),
        in_specs=[vmem, vmem, vmem, vmem, vmem],
        out_specs=(vmem, vmem, vmem),
        scratch_shapes=[pltpu.VMEM((B, H), jnp.float32),
                        pltpu.VMEM((B, H), jnp.float32),
                        pltpu.VMEM((B, H), jnp.float32),
                        pltpu.VMEM((B, H), jnp.float32)],
    )(gin1, whh1_t, wih2_t, whh2_t, b2)
    return out, h_n, c_n


class EncoderPallas:
    """Mirrors the PyTorch Encoder (2 stacked 1-layer LSTMs, batch_first=True)."""

    def __init__(self, seq_len, n_features, hidden_size=512, key=None):
        self.seq_len = seq_len
        self.n_features = n_features
        self.hidden_size = hidden_size
        if key is None:
            key = jax.random.PRNGKey(0)
        k = 1.0 / jnp.sqrt(hidden_size)
        keys = jax.random.split(key, 8)
        H, F = hidden_size, n_features

        def u(kk, shape):
            return jax.random.uniform(kk, shape, jnp.float32, -k, k)

        # PyTorch-layout parameters (kept in f32 for reference checking).
        self.w_ih1 = u(keys[0], (4 * H, F))
        self.w_hh1 = u(keys[1], (4 * H, H))
        self.b_ih1 = u(keys[2], (4 * H,))
        self.b_hh1 = u(keys[3], (4 * H,))
        self.w_ih2 = u(keys[4], (4 * H, H))
        self.w_hh2 = u(keys[5], (4 * H, H))
        self.b_ih2 = u(keys[6], (4 * H,))
        self.b_hh2 = u(keys[7], (4 * H,))

        # Pre-transposed bf16 weights + pre-summed biases (done once, not per call).
        self.wih1_t = jnp.transpose(self.w_ih1).astype(jnp.bfloat16)   # (F, 4H)
        self.whh1_t = jnp.transpose(self.w_hh1).astype(jnp.bfloat16)   # (H, 4H)
        self.b1 = (self.b_ih1 + self.b_hh1).reshape(1, 4 * H).astype(jnp.float32)
        self.wih2_t = jnp.transpose(self.w_ih2).astype(jnp.bfloat16)   # (H, 4H)
        self.whh2_t = jnp.transpose(self.w_hh2).astype(jnp.bfloat16)   # (H, 4H)
        self.b2 = (self.b_ih2 + self.b_hh2).reshape(1, 4 * H).astype(jnp.float32)

    def __call__(self, x):
        # Replicate the PyTorch shape-massaging logic.
        if x.ndim == 2:
            x = x[..., None]
        elif x.ndim == 3:
            if x.shape[1] != self.seq_len or x.shape[2] != self.n_features:
                x = x.reshape(x.shape[0], self.seq_len, self.n_features)
        B, S, F = x.shape
        H = self.hidden_size

        # (B, S, F) -> time-major (S, B, F); pad batch to a sublane multiple.
        x_tm = jnp.transpose(x, (1, 0, 2)).astype(jnp.float32)
        B_pad = max(8, ((B + 7) // 8) * 8)
        if B_pad != B:
            x_tm = jnp.pad(x_tm, ((0, 0), (0, B_pad - B), (0, 0)))

        # Hoisted, time-independent layer-1 input projection:
        # one dense (S*B, F) @ (F, 4H) matmul, bf16 operands / f32 accumulate.
        gin1 = jnp.dot(x_tm.reshape(S * B_pad, F).astype(jnp.bfloat16),
                       self.wih1_t,
                       preferred_element_type=jnp.float32)
        gin1 = gin1.reshape(S, B_pad, 4 * H) + self.b1

        out_tm, h_n, c_n = _encoder_forward(
            gin1, self.whh1_t, self.wih2_t, self.whh2_t, self.b2, H)

        out = jnp.transpose(out_tm[:, :B], (1, 0, 2))   # (B, S, H) batch_first
        hidden_n = h_n[:B][None]                        # (1, B, H) num_layers=1
        cell_n = c_n[:B][None]                          # (1, B, H)
        return out, (hidden_n, cell_n)


def _lstm_layer_ref(x_tm, w_ih, w_hh, b_ih, b_hh, hidden_size):
    """Pure-JAX f32 reference (lax.scan) for validation."""
    S, B, _ = x_tm.shape
    H = hidden_size

    def step(carry, x_t):
        h, c = carry
        gates = x_t @ w_ih.T + h @ w_hh.T + b_ih + b_hh
        i_g = jax.nn.sigmoid(gates[:, 0 * H:1 * H])
        f_g = jax.nn.sigmoid(gates[:, 1 * H:2 * H])
        g_g = jnp.tanh(gates[:, 2 * H:3 * H])
        o_g = jax.nn.sigmoid(gates[:, 3 * H:4 * H])
        c_new = f_g * c + i_g * g_g
        h_new = o_g * jnp.tanh(c_new)
        return (h_new, c_new), h_new

    init = (jnp.zeros((B, H), jnp.float32), jnp.zeros((B, H), jnp.float32))
    (h_n, c_n), out = lax.scan(step, init, x_tm)
    return out, h_n, c_n


if __name__ == "__main__":
    batch, seq_len, n_features, hidden_size = 2, 8, 4, 32

    key = jax.random.PRNGKey(0)
    k_x, k_p = jax.random.split(key)
    x = jax.random.normal(k_x, (batch, seq_len, n_features), jnp.float32)

    enc = EncoderPallas(seq_len, n_features, hidden_size, key=k_p)
    out, (hidden_n, cell_n) = enc(x)
    jax.block_until_ready((out, hidden_n, cell_n))

    assert out.shape == (batch, seq_len, hidden_size)
    assert hidden_n.shape == (1, batch, hidden_size)
    assert cell_n.shape == (1, batch, hidden_size)

    # Validate against a pure-JAX f32 reference.  Matmuls in the kernel use
    # bf16 operands with f32 accumulation, so the tolerance is loosened.
    x_tm = jnp.transpose(x, (1, 0, 2))
    r1, _, _ = _lstm_layer_ref(x_tm, enc.w_ih1, enc.w_hh1,
                               enc.b_ih1, enc.b_hh1, hidden_size)
    r2, rh, rc = _lstm_layer_ref(r1, enc.w_ih2, enc.w_hh2,
                                 enc.b_ih2, enc.b_hh2, hidden_size)
    assert jnp.allclose(out, jnp.transpose(r2, (1, 0, 2)), atol=2e-2), \
        float(jnp.max(jnp.abs(out - jnp.transpose(r2, (1, 0, 2)))))
    assert jnp.allclose(hidden_n[0], rh, atol=2e-2)
    assert jnp.allclose(cell_n[0], rc, atol=2e-2)

    print("KERNEL_OK")
</pallas_src>

<mosaic_0001>
module attributes {stable_mosaic.version = 11 : i64} {
  func.func @_fused_encoder_kernel(%arg0: memref<8x8x128xf32, #tpu.memory_space<vmem>>, %arg1: memref<32x128xbf16, #tpu.memory_space<vmem>>, %arg2: memref<32x128xbf16, #tpu.memory_space<vmem>>, %arg3: memref<32x128xbf16, #tpu.memory_space<vmem>>, %arg4: memref<1x128xf32, #tpu.memory_space<vmem>>, %arg5: memref<8x8x32xf32, #tpu.memory_space<vmem>>, %arg6: memref<8x32xf32, #tpu.memory_space<vmem>>, %arg7: memref<8x32xf32, #tpu.memory_space<vmem>>, %arg8: memref<8x32xf32, #tpu.memory_space<vmem>>, %arg9: memref<8x32xf32, #tpu.memory_space<vmem>>, %arg10: memref<8x32xf32, #tpu.memory_space<vmem>>, %arg11: memref<8x32xf32, #tpu.memory_space<vmem>>) attributes {dimension_semantics = [], scalar_prefetch = 0 : i64, scratch_operands = 4 : i64, tpu.core_type = #tpu.core_type<tc>} {
    %cst = arith.constant 0.000000e+00 : f32
    %0 = vector.broadcast %cst : f32 to vector<8x32xf32>
    %c0 = arith.constant 0 : index
    %c0_0 = arith.constant 0 : index
    %1 = vector.load %arg8[%c0, %c0_0] : memref<8x32xf32, #tpu.memory_space<vmem>>, vector<8x32xf32>
    tpu.vector_store %arg8[%c0, %c0_0], %0 {strides = array<i32>} : memref<8x32xf32, #tpu.memory_space<vmem>>, vector<8x32xf32>,
    %cst_1 = arith.constant 0.000000e+00 : f32
    %2 = vector.broadcast %cst_1 : f32 to vector<8x32xf32>
    %c0_2 = arith.constant 0 : index
    %c0_3 = arith.constant 0 : index
    %3 = vector.load %arg9[%c0_2, %c0_3] : memref<8x32xf32, #tpu.memory_space<vmem>>, vector<8x32xf32>
    tpu.vector_store %arg9[%c0_2, %c0_3], %2 {strides = array<i32>} : memref<8x32xf32, #tpu.memory_space<vmem>>, vector<8x32xf32>,
    %cst_4 = arith.constant 0.000000e+00 : f32
    %4 = vector.broadcast %cst_4 : f32 to vector<8x32xf32>
    %c0_5 = arith.constant 0 : index
    %c0_6 = arith.constant 0 : index
    %5 = vector.load %arg10[%c0_5, %c0_6] : memref<8x32xf32, #tpu.memory_space<vmem>>, vector<8x32xf32>
    tpu.vector_store %arg10[%c0_5, %c0_6], %4 {strides = array<i32>} : memref<8x32xf32, #tpu.memory_space<vmem>>, vector<8x32xf32>,
    %cst_7 = arith.constant 0.000000e+00 : f32
    %6 = vector.broadcast %cst_7 : f32 to vector<8x32xf32>
    %c0_8 = arith.constant 0 : index
    %c0_9 = arith.constant 0 : index
    %7 = vector.load %arg11[%c0_8, %c0_9] : memref<8x32xf32, #tpu.memory_space<vmem>>, vector<8x32xf32>
    tpu.vector_store %arg11[%c0_8, %c0_9], %6 {strides = array<i32>} : memref<8x32xf32, #tpu.memory_space<vmem>>, vector<8x32xf32>,
    %c0_i32 = arith.constant 0 : i32
    %c8_i32 = arith.constant 8 : i32
    %8 = arith.addi %c0_i32, %c8_i32 : i32
    %c1_i32 = arith.constant 1 : i32
    scf.for %arg12 = %c0_i32 to %8 step %c1_i32  : i32 {
      %13 = arith.index_cast %arg12 : i32 to index
      %c0_19 = arith.constant 0 : index
      %c0_20 = arith.constant 0 : index
      %14 = vector.load %arg0[%13, %c0_19, %c0_20] : memref<8x8x128xf32, #tpu.memory_space<vmem>>, vector<1x8x128xf32>
      %15 = vector.shape_cast %14 : vector<1x8x128xf32> to vector<8x128xf32>
      %c0_21 = arith.constant 0 : index
      %c0_22 = arith.constant 0 : index
      %16 = vector.load %arg8[%c0_21, %c0_22] : memref<8x32xf32, #tpu.memory_space<vmem>>, vector<8x32xf32>
      %17 = arith.truncf %16 : vector<8x32xf32> to vector<8x32xbf16>
      %c0_23 = arith.constant 0 : index
      %c0_24 = arith.constant 0 : index
      %18 = vector.load %arg1[%c0_23, %c0_24] : memref<32x128xbf16, #tpu.memory_space<vmem>>, vector<32x128xbf16>
      %cst_25 = arith.constant dense<0.000000e+00> : vector<8x128xf32>
      %19 = tpu.matmul %17, %18, %cst_25 {dimension_numbers = #tpu.dot_dimension_numbers<[1], [0], [0], [1], [0, 0, 1, 1], [], []>} : vector<8x32xbf16>, vector<32x128xbf16>, vector<8x128xf32> -> vector<8x128xf32>
      %20 = arith.addf %15, %19 : vector<8x128xf32>
      %21 = vector.extract_strided_slice %20 {offsets = [0, 0], sizes = [8, 32], strides = [1, 1]} : vector<8x128xf32> to vector<8x32xf32>
      %22 = arith.negf %21 : vector<8x32xf32>
      %23 = math.exp %22 : vector<8x32xf32>
      %cst_26 = arith.constant 1.000000e+00 : f32
      %24 = vector.broadcast %cst_26 : f32 to vector<8x32xf32>
      %25 = arith.addf %24, %23 : vector<8x32xf32>
      %26 = arith.divf %24, %25 : vector<8x32xf32>
      %27 = vector.extract_strided_slice %20 {offsets = [0, 32], sizes = [8, 32], strides = [1, 1]} : vector<8x128xf32> to vector<8x32xf32>
      %28 = arith.negf %27 : vector<8x32xf32>
      %29 = math.exp %28 : vector<8x32xf32>
      %cst_27 = arith.constant 1.000000e+00 : f32
      %30 = vector.broadcast %cst_27 : f32 to vector<8x32xf32>
      %31 = arith.addf %30, %29 : vector<8x32xf32>
      %32 = arith.divf %30, %31 : vector<8x32xf32>
      %33 = vector.extract_strided_slice %20 {offsets = [0, 64], sizes = [8, 32], strides = [1, 1]} : vector<8x128xf32> to vector<8x32xf32>
      %34 = math.tanh %33 : vector<8x32xf32>
      %35 = vector.extract_strided_slice %20 {offsets = [0, 96], sizes = [8, 32], strides = [1, 1]} : vector<8x128xf32> to vector<8x32xf32>
      %36 = arith.negf %35 : vector<8x32xf32>
      %37 = math.exp %36 : vector<8x32xf32>
      %cst_28 = arith.constant 1.000000e+00 : f32
      %38 = vector.broadcast %cst_28 : f32 to vector<8x32xf32>
      %39 = arith.addf %38, %37 : vector<8x32xf32>
      %40 = arith.divf %38, %39 : vector<8x32xf32>
      %c0_29 = arith.constant 0 : index
      %c0_30 = arith.constant 0 : index
      %41 = vector.load %arg9[%c0_29, %c0_30] : memref<8x32xf32, #tpu.memory_space<vmem>>, vector<8x32xf32>
      %42 = arith.mulf %32, %41 : vector<8x32xf32>
      %43 = arith.mulf %26, %34 : vector<8x32xf32>
      %44 = arith.addf %42, %43 : vector<8x32xf32>
      %45 = math.tanh %44 : vector<8x32xf32>
      %46 = arith.mulf %40, %45 : vector<8x32xf32>
      %c0_31 = arith.constant 0 : index
      %c0_32 = arith.constant 0 : index
      %47 = vector.load %arg8[%c0_31, %c0_32] : memref<8x32xf32, #tpu.memory_space<vmem>>, vector<8x32xf32>
      tpu.vector_store %arg8[%c0_31, %c0_32], %46 {strides = array<i32>} : memref<8x32xf32, #tpu.memory_space<vmem>>, vector<8x32xf32>,
      %c0_33 = arith.constant 0 : index
      %c0_34 = arith.constant 0 : index
      %48 = vector.load %arg9[%c0_33, %c0_34] : memref<8x32xf32, #tpu.memory_space<vmem>>, vector<8x32xf32>
      tpu.vector_store %arg9[%c0_33, %c0_34], %44 {strides = array<i32>} : memref<8x32xf32, #tpu.memory_space<vmem>>, vector<8x32xf32>,
      %49 = arith.truncf %46 : vector<8x32xf32> to vector<8x32xbf16>
      %c0_35 = arith.constant 0 : index
      %c0_36 = arith.constant 0 : index
      %50 = vector.load %arg2[%c0_35, %c0_36] : memref<32x128xbf16, #tpu.memory_space<vmem>>, vector<32x128xbf16>
      %cst_37 = arith.constant dense<0.000000e+00> : vector<8x128xf32>
      %51 = tpu.matmul %49, %50, %cst_37 {dimension_numbers = #tpu.dot_dimension_numbers<[1], [0], [0], [1], [0, 0, 1, 1], [], []>} : vector<8x32xbf16>, vector<32x128xbf16>, vector<8x128xf32> -> vector<8x128xf32>
      %c0_38 = arith.constant 0 : index
      %c0_39 = arith.constant 0 : index
      %52 = vector.load %arg10[%c0_38, %c0_39] : memref<8x32xf32, #tpu.memory_space<vmem>>, vector<8x32xf32>
      %53 = arith.truncf %52 : vector<8x32xf32> to vector<8x32xbf16>
      %c0_40 = arith.constant 0 : index
      %c0_41 = arith.constant 0 : index
      %54 = vector.load %arg3[%c0_40, %c0_41] : memref<32x128xbf16, #tpu.memory_space<vmem>>, vector<32x128xbf16>
      %cst_42 = arith.constant dense<0.000000e+00> : vector<8x128xf32>
      %55 = tpu.matmul %53, %54, %cst_42 {dimension_numbers = #tpu.dot_dimension_numbers<[1], [0], [0], [1], [0, 0, 1, 1], [], []>} : vector<8x32xbf16>, vector<32x128xbf16>, vector<8x128xf32> -> vector<8x128xf32>
      %56 = arith.addf %51, %55 : vector<8x128xf32>
      %c0_43 = arith.constant 0 : index
      %c0_44 = arith.constant 0 : index
      %57 = vector.load %arg4[%c0_43, %c0_44] : memref<1x128xf32, #tpu.memory_space<vmem>>, vector<1x128xf32>
      %58 = vector.broadcast %57 : vector<1x128xf32> to vector<8x128xf32>
      %59 = arith.addf %56, %58 : vector<8x128xf32>
      %60 = vector.extract_strided_slice %59 {offsets = [0, 0], sizes = [8, 32], strides = [1, 1]} : vector<8x128xf32> to vector<8x32xf32>
      %61 = arith.negf %60 : vector<8x32xf32>
      %62 = math.exp %61 : vector<8x32xf32>
      %cst_45 = arith.constant 1.000000e+00 : f32
      %63 = vector.broadcast %cst_45 : f32 to vector<8x32xf32>
      %64 = arith.addf %63, %62 : vector<8x32xf32>
      %65 = arith.divf %63, %64 : vector<8x32xf32>
      %66 = vector.extract_strided_slice %59 {offsets = [0, 32], sizes = [8, 32], strides = [1, 1]} : vector<8x128xf32> to vector<8x32xf32>
      %67 = arith.negf %66 : vector<8x32xf32>
      %68 = math.exp %67 : vector<8x32xf32>
      %cst_46 = arith.constant 1.000000e+00 : f32
      %69 = vector.broadcast %cst_46 : f32 to vector<8x32xf32>
      %70 = arith.addf %69, %68 : vector<8x32xf32>
      %71 = arith.divf %69, %70 : vector<8x32xf32>
      %72 = vector.extract_strided_slice %59 {offsets = [0, 64], sizes = [8, 32], strides = [1, 1]} : vector<8x128xf32> to vector<8x32xf32>
      %73 = math.tanh %72 : vector<8x32xf32>
      %74 = vector.extract_strided_slice %59 {offsets = [0, 96], sizes = [8, 32], strides = [1, 1]} : vector<8x128xf32> to vector<8x32xf32>
      %75 = arith.negf %74 : vector<8x32xf32>
      %76 = math.exp %75 : vector<8x32xf32>
      %cst_47 = arith.constant 1.000000e+00 : f32
      %77 = vector.broadcast %cst_47 : f32 to vector<8x32xf32>
      %78 = arith.addf %77, %76 : vector<8x32xf32>
      %79 = arith.divf %77, %78 : vector<8x32xf32>
      %c0_48 = arith.constant 0 : index
      %c0_49 = arith.constant 0 : index
      %80 = vector.load %arg11[%c0_48, %c0_49] : memref<8x32xf32, #tpu.memory_space<vmem>>, vector<8x32xf32>
      %81 = arith.mulf %71, %80 : vector<8x32xf32>
      %82 = arith.mulf %65, %73 : vector<8x32xf32>
      %83 = arith.addf %81, %82 : vector<8x32xf32>
      %84 = math.tanh %83 : vector<8x32xf32>
      %85 = arith.mulf %79, %84 : vector<8x32xf32>
      %c0_50 = arith.constant 0 : index
      %c0_51 = arith.constant 0 : index
      %86 = vector.load %arg10[%c0_50, %c0_51] : memref<8x32xf32, #tpu.memory_space<vmem>>, vector<8x32xf32>
      tpu.vector_store %arg10[%c0_50, %c0_51], %85 {strides = array<i32>} : memref<8x32xf32, #tpu.memory_space<vmem>>, vector<8x32xf32>,
      %c0_52 = arith.constant 0 : index
      %c0_53 = arith.constant 0 : index
      %87 = vector.load %arg11[%c0_52, %c0_53] : memref<8x32xf32, #tpu.memory_space<vmem>>, vector<8x32xf32>
      tpu.vector_store %arg11[%c0_52, %c0_53], %83 {strides = array<i32>} : memref<8x32xf32, #tpu.memory_space<vmem>>, vector<8x32xf32>,
      %88 = arith.index_cast %arg12 : i32 to index
      %c0_54 = arith.constant 0 : index
      %c0_55 = arith.constant 0 : index
      %89 = vector.load %arg5[%88, %c0_54, %c0_55] : memref<8x8x32xf32, #tpu.memory_space<vmem>>, vector<1x8x32xf32>
      %90 = vector.shape_cast %89 : vector<1x8x32xf32> to vector<8x32xf32>
      %91 = vector.shape_cast %85 : vector<8x32xf32> to vector<1x8x32xf32>
      tpu.vector_store %arg5[%88, %c0_54, %c0_55], %91 {strides = array<i32>} : memref<8x8x32xf32, #tpu.memory_space<vmem>>, vector<1x8x32xf32>,
    }
    %c8_i32_10 = arith.constant 8 : i32
    %c0_11 = arith.constant 0 : index
    %c0_12 = arith.constant 0 : index
    %9 = vector.load %arg10[%c0_11, %c0_12] : memref<8x32xf32, #tpu.memory_space<vmem>>, vector<8x32xf32>
    %c0_13 = arith.constant 0 : index
    %c0_14 = arith.constant 0 : index
    %10 = vector.load %arg6[%c0_13, %c0_14] : memref<8x32xf32, #tpu.memory_space<vmem>>, vector<8x32xf32>
    tpu.vector_store %arg6[%c0_13, %c0_14], %9 {strides = array<i32>} : memref<8x32xf32, #tpu.memory_space<vmem>>, vector<8x32xf32>,
    %c0_15 = arith.constant 0 : index
    %c0_16 = arith.constant 0 : index
    %11 = vector.load %arg11[%c0_15, %c0_16] : memref<8x32xf32, #tpu.memory_space<vmem>>, vector<8x32xf32>
    %c0_17 = arith.constant 0 : index
    %c0_18 = arith.constant 0 : index
    %12 = vector.load %arg7[%c0_17, %c0_18] : memref<8x32xf32, #tpu.memory_space<vmem>>, vector<8x32xf32>
    tpu.vector_store %arg7[%c0_17, %c0_18], %11 {strides = array<i32>} : memref<8x32xf32, #tpu.memory_space<vmem>>, vector<8x32xf32>,
    return
  }
}

</mosaic_0001>

<bundles_post_ra>
// kernel: tpu_custom_call.1
= control target key start
LH: loop header
LB: loop body
LE: loop exit
PB: predicated region body
PF: predicated region fallthrough
CT: control target
= control target key end

     0   :  { %13 = vsyncpa [#allocation7], 0  ;;  %s904_s0 = inlined_call_operand.hbm [shape: f32[8,8,128], index: 0, kind: input, shape index: {}]   ;;  %s905_s1 = inlined_call_operand.hbm [shape: bf16[32,128], index: 1, kind: input, shape index: {}]   ;;  %s906_s2 = inlined_call_operand.hbm [shape: bf16[32,128], index: 2, kind: input, shape index: {}]   ;;  %s907_s3 = inlined_call_operand.hbm [shape: bf16[32,128], index: 3, kind: input, shape index: {}]   ;;  %s908_s4 = inlined_call_operand.vmem [shape: f32[1,128], index: 4, kind: input, shape index: {}]   ;;  %s909_s5 = inlined_call_operand.hbm [shape: f32[8,8,32], index: 5, kind: output, shape index: {0}]   ;;  %s910_s6 = inlined_call_operand.hbm [shape: f32[8,32], index: 6, kind: output, shape index: {1}]   ;;  %s911_s7 = inlined_call_operand.hbm [shape: f32[8,32], index: 7, kind: output, shape index: {2}]  }
   0x1   :  { %14 = vsyncpa [#allocation10], 0 }
   0x2   :  { %15 = vsyncpa [#allocation13], 0 }
   0x3   :  { %16 = vsyncpa [#allocation8], 0 }
   0x4   :  { %17 = vsyncpa [#allocation16], 0  ;;  %s693_s24 = smov [#allocation9]   ;;  %s521_s28 = scalar_lea.hbm %s905_s1, 256 }
   0x5   :  { %s35_s25 = sshll.u32 %s693_s24, 4  ;;  %p522_p0 = scmp.ne.s32.totalorder %s905_s1, %s521_s28  ;;  %s36_s25 = int_to_ptr.vmem [resolvable:$true] %s35_s25 }
   0x6   :  { %p525_p1 = scmp.lt.u32.totalorder %s521_s28, %s905_s1 }
   0x8   :  { %p527_p2 = pnand %p525_p1, %p522_p0 }
   0xa   :  { %530 = shalt.err (!%p527_p2)
}
   0xb   :  { %s531_s10 = scalar_lea.vmem %s36_s25, 256  ;;  %p536_p4 = scmp.lt.s32.totalorder %s36_s25, %s36_s25 }
   0xc   :  { %p532_p3 = scmp.ne.s32.totalorder %s36_s25, %s531_s10  ;;  %p537_p5 = scmp.lt.s32.totalorder %s531_s10, %s531_s10 }
   0xe   :  { %p538_p6 = por %p537_p5, %p536_p4 }
  0x10   :  { %p539_p7 = pnand %p538_p6, %p532_p3 }
  0x12   :  { %542 = shalt.err (!%p539_p7)
}
  0x13   :  { %s694_s11 = smov 64   ;;  %s695_s12 = smov 4  }
  0x14   :  { %41 = dma.hbm_to_vmem [thread:$0]  %s905_s1, 256, %s36_s25, [#allocation10], %s694_s11, %s694_s11, %s695_s12  }
  0x15   :  { %s696_s15 = smov [#allocation6]   ;;  %s543_s19 = scalar_lea.hbm %s904_s0, 1024 }
  0x16   :  { %s23_s16 = sshll.u32 %s696_s15, 4  ;;  %p544_p8 = scmp.ne.s32.totalorder %s904_s0, %s543_s19  ;;  %s24_s16 = int_to_ptr.vmem [resolvable:$true] %s23_s16 }
  0x17   :  { %p547_p9 = scmp.lt.u32.totalorder %s543_s19, %s904_s0 }
  0x19   :  { %p549_p10 = pnand %p547_p9, %p544_p8 }
  0x1b   :  { %552 = shalt.err (!%p549_p10)
}
  0x1c   :  { %s553_s24 = scalar_lea.vmem %s24_s16, 1024  ;;  %p558_p12 = scmp.lt.s32.totalorder %s24_s16, %s24_s16 }
  0x1d   :  { %p554_p11 = scmp.ne.s32.totalorder %s24_s16, %s553_s24  ;;  %p559_p13 = scmp.lt.s32.totalorder %s553_s24, %s553_s24 }
  0x1f   :  { %p560_p0 = por %p559_p13, %p558_p12 }
  0x21   :  { %p561_p1 = pnand %p560_p0, %p554_p11 }
  0x23   :  { %564 = shalt.err (!%p561_p1)
}
  0x24   :  { %s697_s1 = smov 128   ;;  %s698_s25 = smov 8  }
  0x25   :  { %29 = dma.hbm_to_vmem [thread:$0]  %s904_s0, 1024, %s24_s16, [#allocation7], %s697_s1, %s697_s1, %s698_s25  }
  0x26   :  { %s699_s28 = smov [#allocation11]   ;;  %s700_s30 = smov [#allocation12]  }
  0x27   :  { %s47_s29 = sshll.u32 %s699_s28, 4  ;;  %s59_s8 = sshll.u32 %s700_s30, 4  ;;  %s48_s29 = int_to_ptr.vmem [resolvable:$true] %s47_s29  ;;  %s780_s8 = int_to_ptr.vmem [resolvable:$true] %s59_s8 }
  0x28   :  { %s565_s13 = scalar_lea.hbm %s906_s2, 256 }
  0x29   :  { %p566_p2 = scmp.ne.s32.totalorder %s906_s2, %s565_s13  ;;  %p569_p3 = scmp.lt.u32.totalorder %s565_s13, %s906_s2 }
  0x2b   :  { %p571_p4 = pnand %p569_p3, %p566_p2 }
  0x2d   :  { %574 = shalt.err (!%p571_p4)
}
  0x2e   :  { %s575_s0 = scalar_lea.vmem %s48_s29, 256  ;;  %p580_p6 = scmp.lt.s32.totalorder %s48_s29, %s48_s29 }
  0x2f   :  { %p576_p5 = scmp.ne.s32.totalorder %s48_s29, %s575_s0  ;;  %p581_p7 = scmp.lt.s32.totalorder %s575_s0, %s575_s0 }
  0x31   :  { %p582_p8 = por %p581_p7, %p580_p6 }
  0x33   :  { %p583_p9 = pnand %p582_p8, %p576_p5 }
  0x35   :  { %586 = shalt.err (!%p583_p9)
}
  0x36   :  { %53 = dma.hbm_to_vmem [thread:$0]  %s906_s2, 256, %s48_s29, [#allocation10], %s694_s11, %s694_s11, %s695_s12  }
  0x37   :  { %s587_s22 = scalar_lea.hbm %s907_s3, 256 }
  0x38   :  { %p588_p10 = scmp.ne.s32.totalorder %s907_s3, %s587_s22  ;;  %p591_p11 = scmp.lt.u32.totalorder %s587_s22, %s907_s3 }
  0x3a   :  { %p593_p12 = pnand %p591_p11, %p588_p10 }
  0x3c   :  { %596 = shalt.err (!%p593_p12)
}
  0x3d   :  { %s597_s28 = scalar_lea.vmem %s780_s8, 256  ;;  %p602_p0 = scmp.lt.s32.totalorder %s780_s8, %s780_s8 }
  0x3e   :  { %p598_p13 = scmp.ne.s32.totalorder %s780_s8, %s597_s28  ;;  %p603_p1 = scmp.lt.s32.totalorder %s597_s28, %s597_s28 }
  0x40   :  { %p604_p2 = por %p603_p1, %p602_p0 }
  0x42   :  { %p605_p3 = pnand %p604_p2, %p598_p13 }
  0x44   :  { %608 = shalt.err (!%p605_p3)
}
  0x45   :  { %65 = dma.hbm_to_vmem [thread:$0]  %s907_s3, 256, %s780_s8, [#allocation13], %s694_s11, %s694_s11, %s695_s12  }
  0x46   :  { %679 = dma.done.wait [#allocation7], 1024  }
  0x47   :  { %680 = vsyncadd [#allocation7], 4294966272 }
  0x48   :  { %681 = dma.done.wait [#allocation10], 512  }
  0x49   :  { %682 = vsyncadd [#allocation10], 4294966784 }
  0x4a   :  { %683 = dma.done.wait [#allocation13], 256  }
  0x4b   :  { %684 = vsyncadd [#allocation13], 4294967040  ;;  %vm81_vm0 = vcmask 261120   ;;  %v701_v0 = vmov 0.0   ;;  %s821_s30 = smov 0  }
  0x4c   :  { %82 = vst.msk [vmem:[#allocation2] sm:$0xff] %vm81_vm0, %v701_v0  ;;  %83 = vst.msk [vmem:[#allocation3] sm:$0xff] %vm81_vm0, %v701_v0 }
  0x4d   :  { %84 = vst.msk [vmem:[#allocation4] sm:$0xff] %vm81_vm0, %v701_v0  ;;  %85 = vst.msk [vmem:[#allocation5] sm:$0xff] %vm81_vm0, %v701_v0 }
  0x4e LB: > { %v499_v1 = vld [vmem:[#allocation9] sm:$0xff]   ;;  %v702_v2 = vmov 0.0   ;;  %v500_v3 = vld [vmem:[#allocation9 + $0x8] sm:$0xff]   ;;  %vm703_vm1 = vmmov 0   ;;  %s428_s3 = sshll.u32 %s691_s30, 3  ;;  %s704_s12 = smov 64   ;;  %s691_s30 = sphi %s821_s30, %s91_s30  }
  0x4f   : > { %450 = vmatprep.subr.bf16.mxu0 %v702_v2  ;;  %458 = vmatprep.subr.bf16.mxu1 %v702_v2  ;;  %s93_s11 = scalar_lea.vmem [#allocation6], %s428_s3  ;;  %s705_s8 = smov 32   ;;  %v501_v24 = vld [vmem:[#allocation12] sm:$0xff]   ;;  %v502_v25 = vld [vmem:[#allocation11] sm:$0xff]   ;;  %v503_v26 = vld [vmem:[#allocation12 + $0x8] sm:$0xff]  }
  0x50   : > { %451 = vmatpush3.bf16.msra.mxu0 %v499_v1  ;;  %454 = vmatprep.mubr.msk.bf16.mxu0 %vm703_vm1, %v702_v2  ;;  %v94_v6 = vld [vmem:[%s93_s11] sm:$0xff]  ;;  %v504_v27 = vld [vmem:[#allocation11 + $0x8] sm:$0xff]   ;;  %s706_s13 = smov 96   ;;  %s367_s14 = scalar_lea.vmem [#allocation14], %s428_s3 }
  0x51   : > { %452 = vmatprep.subr.bf16.mxu0 %v702_v2  ;;  %462 = vmatprep.mubr.msk.bf16.mxu1 %vm703_vm1, %v702_v2  ;;  %v439_v41 = vld [vmem:[%s908_s4] ss:$0 sm:$0xff]  ;;  %s91_s30 = sadd.s32 1, %s691_s30  }
  0x52   : > { %459 = vmatpush3.bf16.msra.mxu1 %v501_v24  ;;  %p88_p4 = scmp.ge.s32.totalorder %s91_s30, 8  }
  0x53   : > { %v95_v4 = vld [vmem:[#allocation2] sm:$0xff]  ;;  %v164_v13 = vld [vmem:[#allocation3] sm:$0xff]  ;;  %460 = vmatprep.subr.bf16.mxu1 %v702_v2  ;;  %s707_s15 = smov (%p88_p4), [#allocation15]   ;;  %s708_s18 = smov (%p88_p4), [#allocation14]  }
  0x54   : > { %v96_v5 = vpack.c.bf16 %v95_v4, %v95_v4  ;;  %453 = vmatpush3.bf16.msra.mxu0 %v500_v3  ;;  %v201_v28 = vld [vmem:[#allocation4] sm:$0xff]  ;;  %v335_v34 = vld [vmem:[#allocation5] sm:$0xff]  ;;  %s391_s17 = sshll.u32 (%p88_p4), %s707_s15, 4  ;;  %s378_s0 = sshll.u32 (%p88_p4), %s708_s18, 4  ;;  %s392_s17 = int_to_ptr.vmem [resolvable:$true] %s391_s17  ;;  %s858_s0 = int_to_ptr.vmem [resolvable:$true] %s378_s0 }
  0x55   : > { %466 = vmatprep.subr.bf16.mxu0 %v702_v2  ;;  %v202_v29 = vpack.c.bf16 %v201_v28, %v201_v28  ;;  %s609_s16 = scalar_lea.vmem (%p88_p4), %s392_s17, 128  ;;  %p614_p6 = scmp.lt.s32.totalorder (%p88_p4), %s392_s17, %s392_s17 }
  0x56   : > { %461 = vmatpush3.bf16.msra.mxu1 %v503_v26  ;;  %p610_p5 = scmp.ne.s32.totalorder (%p88_p4), %s392_s17, %s609_s16  ;;  %p615_p7 = scmp.lt.s32.totalorder (%p88_p4), %s609_s16, %s609_s16 }
  0x57   : > { %455 = vmatmul.mubr.msk.bf16.vlgmr.msra.gmra.mrb[0].mxu0 %vm81_vm0, %v96_v5 }
  0x58   : > { %470 = vmatprep.mubr.msk.bf16.mxu0 %vm703_vm1, %v702_v2  ;;  %467 = vmatpush3.bf16.msra.mxu0 %v502_v25  ;;  %p616_p8 = por (%p88_p4), %p615_p7, %p614_p6 }
  0x59   : > { %468 = vmatprep.subr.bf16.mxu0 %v702_v2  ;;  %463 = vmatmul.mubr.msk.bf16.vlgmr.msra.gmra.mrb[0].mxu1 %vm81_vm0, %v202_v29 }
  0x5a   :  { %p617_p9 = pnand (%p88_p4), %p616_p8, %p610_p5 }
  0x5c   : > { %469 = vmatpush3.bf16.msra.mxu0 %v504_v27 }
 0x12a   : > { %v150_v7 = vpop.f32.mrb[0].mxu0 }
 0x12b   : > { %v156_v8 = vadd.f32 %v150_v7, %v94_v6  ;;  %v456_v9 = vpop.f32.mrb[1].mxu0 }
 0x12c   : > { %v153_v10 = vpop.f32.mrb[2].mxu0  ;;  %v256_v35 = vpop.f32.mrb[0].mxu1 }
 0x12d   : > { %505 = vtanh.f32 %v156_v8  ;;  %v457_v11 = vpop.f32.mrb[3].mxu0  ;;  %v432_v14 = vmul.f32 -1.442695, %v156_v8  ;;  %v464_v36 = vpop.f32.mrb[1].mxu1 }
 0x12e   : > { %v259_v37 = vpop.f32.mrb[2].mxu1 }
 0x12f   : > { %507 = vpow2.f32 %v432_v14  ;;  %v465_v38 = vpop.f32.mrb[3].mxu1 }
 0x137   : > { %v506_v12 = vpop.eup %505 }
 0x138   : > { %171 = vrot.lane.b32.xlu0 %v506_v12, %s704_s12 }
 0x139   : > { %v508_v15 = vpop.eup %507 }
 0x13a   : > { %v160_v16 = vadd.f32 1.0, %v508_v15 }
 0x13c   : > { %166 = vrot.lane.b32.xlu0 %v164_v13, %s705_s8  ;;  %509 = vrcp.f32 %v160_v16 }
 0x146   : > { %v510_v17 = vpop.eup %509 }
 0x1aa   : > { %v172_v18 = vpop.permute.xlu0 %171 }
 0x1ab   : > { %v174_v19 = vmul.f32 %v510_v17, %v172_v18 }
 0x1ad   : > { %176 = vrot.lane.b32.xlu1 %v174_v19, %s705_s8 }
 0x1ae   : > { %v167_v20 = vpop.permute.xlu0 %166 }
 0x1af   : > { %v169_v21 = vmul.f32 %v510_v17, %v167_v20 }
 0x21f   : > { %v177_v22 = vpop.permute.xlu1 %176 }
 0x220   : > { %v179_v23 = vadd.f32 %v177_v22, %v169_v21 }
 0x222   : > { %511 = vtanh.f32 %v179_v23 }
 0x22c   : > { %v512_v30 = vpop.eup %511 }
 0x22d   : > { %182 = vrot.lane.b32.xlu1 %v512_v30, %s704_s12 }
 0x29f   : > { %v183_v31 = vpop.permute.xlu1 %182 }
 0x2a0   : > { %v185_v32 = vmul.f32 %v510_v17, %v183_v31 }
 0x2a2   : > { %v196_v33 = vpack.c.bf16 %v185_v32, %v185_v32 }
 0x2a4   : > { %263 = vrot.lane.b32.xlu0 %v196_v33, %s705_s8 }
 0x2a8   : > { %337 = vrot.lane.b32.xlu0 %v335_v34, %s705_s8 }
 0x316   : > { %v264_v39 = vpop.permute.xlu0 %263 }
 0x317   : > { %471 = vmatmul.mubr.msk.bf16.vlgmr.msra.gmra.mrb[4].mxu0 %vm81_vm0, %v264_v39 }
 0x31a   : > { %v338_v54 = vpop.permute.xlu0 %337 }
 0x3ea   : > { %v314_v40 = vpop.f32.mrb[4].mxu0 }
 0x3eb   : > { %v315_v42 = vadd.f32 %v314_v40, %v256_v35  ;;  %v472_v43 = vpop.f32.mrb[5].mxu0 }
 0x3ec   : > { %v317_v44 = vpop.f32.mrb[6].mxu0 }
 0x3ed   : > { %v327_v45 = vadd.f32 %v439_v41, %v315_v42  ;;  %v473_v46 = vpop.f32.mrb[7].mxu0 }
 0x3ef   : > { %513 = vtanh.f32 %v327_v45  ;;  %v440_v48 = vmul.f32 -1.442695, %v327_v45 }
 0x3f1   : > { %515 = vpow2.f32 %v440_v48 }
 0x3f9   : > { %v514_v47 = vpop.eup %513 }
 0x3fa   : > { %342 = vrot.lane.b32.xlu1 %v514_v47, %s704_s12 }
 0x3fb   : > { %v516_v49 = vpop.eup %515 }
 0x3fc   : > { %v331_v50 = vadd.f32 1.0, %v516_v49 }
 0x3fe   : > { %517 = vrcp.f32 %v331_v50 }
 0x408   : > { %v518_v51 = vpop.eup %517 }
 0x409   : > { %v340_v55 = vmul.f32 %v518_v51, %v338_v54 }
 0x46c   : > { %v343_v52 = vpop.permute.xlu1 %342 }
 0x46d   : > { %v345_v53 = vmul.f32 %v518_v51, %v343_v52 }
 0x46f   : > { %347 = vrot.lane.b32.xlu1 %v345_v53, %s705_s8 }
 0x473   : > { %187 = vrot.lane.b32.xlu1 %v185_v32, %s705_s8 }
 0x4e1   : > { %v348_v56 = vpop.permute.xlu1 %347 }
 0x4e2   : > { %v350_v57 = vadd.f32 %v348_v56, %v340_v55 }
 0x4e4   : > { %519 = vtanh.f32 %v350_v57 }
 0x4e5   : > { %v188_v58 = vpop.permute.xlu1 %187 }
 0x4e6   : > { %190 = vst.msk [vmem:[#allocation2] sm:$0xff] %vm81_vm0, %v188_v58 }
 0x4ee   : > { %v520_v59 = vpop.eup %519 }
 0x4ef   : > { %353 = vrot.lane.b32.xlu0 %v520_v59, %s704_s12 }
 0x4f3   : > { %192 = vrot.lane.b32.xlu0 %v179_v23, %s706_s13 }
 0x4f7   : > { %363 = vrot.lane.b32.xlu0 %v350_v57, %s706_s13 }
 0x561   : > { %v354_v60 = vpop.permute.xlu0 %353 }
 0x562   : > { %v356_v61 = vmul.f32 %v518_v51, %v354_v60 }
 0x564   : > { %358 = vrot.lane.b32.xlu1 %v356_v61, %s705_s8 }
 0x565   : > { %v193_v62 = vpop.permute.xlu0 %192 }
 0x566   : > { %195 = vst.msk [vmem:[#allocation3] sm:$0xff] %vm81_vm0, %v193_v62 }
 0x569   : > { %v364_v63 = vpop.permute.xlu0 %363 }
 0x56a   : > { %366 = vst.msk [vmem:[#allocation5] sm:$0xff] %vm81_vm0, %v364_v63 }
 0x571   :  { %v371_v2 = vld [vmem:[#allocation5] sm:$0xff] (%p88_p4) }
 0x572   :  { %372 = vst.msk [vmem:[#allocation17] sm:$0xff] (%p88_p4), %vm81_vm0, %v371_v2 }
 0x5d1   :  { %90 = sbr.rel (!%p88_p4) target bundleno = 78 (0x4e), region = 81 }
 0x5d6   : > { %v359_v0 = vpop.permute.xlu1 %358 }
 0x5d7   : > { %361 = vst.msk [vmem:[#allocation4] sm:$0xff] %vm81_vm0, %v359_v0  ;;  %368 = vst.msk [vmem:[%s367_s14] sm:$0xff] %vm81_vm0, %v359_v0 }
 0x5de   :  { %v369_v1 = vld [vmem:[#allocation4] sm:$0xff] }
 0x5df   :  { %370 = vst.msk [vmem:[#allocation15] sm:$0xff] %vm81_vm0, %v369_v1 }
 0x5e0   :  { %620 = shalt.err (!%p617_p9)
}
 0x5e1   :  { %s621_s20 = scalar_lea.hbm %s910_s6, 128 }
 0x5e2   :  { %p622_p10 = scmp.ne.s32.totalorder %s910_s6, %s621_s20  ;;  %p625_p11 = scmp.lt.u32.totalorder %s621_s20, %s910_s6 }
 0x5e4   :  { %p627_p12 = pnand %p625_p11, %p622_p10 }
 0x5e6   :  { %630 = shalt.err (!%p627_p12)
}
 0x5e7   :  { %394 = dma.vmem_to_hbm [thread:$0]  %s392_s17, 128, %s910_s6, [#allocation16]  }
 0x5e8   :  { %s631_s28 = scalar_lea.vmem %s858_s0, 1024  ;;  %p636_p0 = scmp.lt.s32.totalorder %s858_s0, %s858_s0 }
 0x5e9   :  { %p632_p13 = scmp.ne.s32.totalorder %s858_s0, %s631_s28  ;;  %p637_p1 = scmp.lt.s32.totalorder %s631_s28, %s631_s28 }
 0x5eb   :  { %p638_p2 = por %p637_p1, %p636_p0 }
 0x5ed   :  { %p639_p3 = pnand %p638_p2, %p632_p13 }
 0x5ef   :  { %642 = shalt.err (!%p639_p3)
}
 0x5f0   :  { %s643_s30 = scalar_lea.hbm %s909_s5, 1024 }
 0x5f1   :  { %p644_p4 = scmp.ne.s32.totalorder %s909_s5, %s643_s30  ;;  %p647_p5 = scmp.lt.u32.totalorder %s643_s30, %s909_s5 }
 0x5f3   :  { %p649_p6 = pnand %p647_p5, %p644_p4 }
 0x5f5   :  { %652 = shalt.err (!%p649_p6)
}
 0x5f6   :  { %384 = dma.vmem_to_hbm [thread:$0]  %s858_s0, 1024, %s909_s5, [#allocation8], %s697_s1, %s697_s1, %s698_s25  }
 0x5f7   :  { %s709_s10 = smov [#allocation17]  }
 0x5f8   :  { %s401_s13 = sshll.u32 %s709_s10, 4  ;;  %s402_s13 = int_to_ptr.vmem [resolvable:$true] %s401_s13 }
 0x5f9   :  { %s653_s14 = scalar_lea.vmem %s402_s13, 128  ;;  %p658_p8 = scmp.lt.s32.totalorder %s402_s13, %s402_s13 }
 0x5fa   :  { %p654_p7 = scmp.ne.s32.totalorder %s402_s13, %s653_s14  ;;  %p659_p9 = scmp.lt.s32.totalorder %s653_s14, %s653_s14 }
 0x5fc   :  { %p660_p10 = por %p659_p9, %p658_p8 }
 0x5fe   :  { %p661_p11 = pnand %p660_p10, %p654_p7 }
 0x600   :  { %664 = shalt.err (!%p661_p11)
}
 0x601   :  { %s665_s18 = scalar_lea.hbm %s911_s7, 128 }
 0x602   :  { %p666_p12 = scmp.ne.s32.totalorder %s911_s7, %s665_s18  ;;  %p669_p13 = scmp.lt.u32.totalorder %s665_s18, %s911_s7 }
 0x604   :  { %p671_p0 = pnand %p669_p13, %p666_p12 }
 0x606   :  { %674 = shalt.err (!%p671_p0)
}
 0x607   :  { %404 = dma.vmem_to_hbm [thread:$0]  %s402_s13, 128, %s911_s7, [#allocation16]  }
 0x608   :  { %685 = dma.done.wait [#allocation8], 1024  }
 0x609   :  { %686 = vsyncadd [#allocation8], 4294966272 }
 0x60a   :  { %687 = dma.done.wait [#allocation16], 256  }
 0x60b   :  { %688 = vsyncadd [#allocation16], 4294967040 }
 0x60c   :  { %414 = vsyncpa [#allocation7], 1 }
 0x60d   :  { %415 = vsyncpa [#allocation10], 1 }
 0x60e   :  { %416 = vsyncpa [#allocation13], 1 }
 0x60f   :  { %417 = vsyncpa [#allocation8], 1 }
 0x610   :  { %418 = vsyncpa [#allocation16], 1 }

</bundles_post_ra>
